<compile_context>
chip_gen: v5e
topology: v5e:2x2
jax: 0.10.0
libtpu: 0.0.40
codegen_flags: <defaults>
</compile_context>

<pallas_src>
import functools

import jax
import jax.numpy as jnp
from jax import lax
from jax.experimental import pallas as pl
from jax.experimental.pallas import tpu as pltpu


def _basic_conv_kernel(x_ref, w_ref, bias_ref, o_ref, *, kh, ho, apply_relu):
    """One batch element per grid step.

    x_ref   : (1, Hp, W*Cin)        row-padded, channel-merged NHWC input
    w_ref   : (KH, W*Cin, Wo*Cout)  banded conv weight (BN scale folded in)
    bias_ref: (1, Wo*Cout)          folded BN bias, tiled per output column
    o_ref   : (1, Ho, Wo*Cout)      lane-dense output tile
    """
    acc = jnp.dot(x_ref[0, 0:ho, :], w_ref[0],
                  preferred_element_type=jnp.float32)
    for i in range(1, kh):  # static unroll over kernel rows (kh is small)
        acc = acc + jnp.dot(x_ref[0, i:i + ho, :], w_ref[i],
                            preferred_element_type=jnp.float32)

    # Fused (folded) BatchNorm bias + ReLU, all lane dense.
    y = acc + bias_ref[...]
    if apply_relu:
        y = jnp.maximum(y, 0.0)
    o_ref[0] = y.astype(o_ref.dtype)


def basic_conv(x_nchw, weight_oihw, gamma, beta, running_mean, running_var,
               *, stride=1, padding=0, dilation=1, groups=1, eps=1e-5,
               relu=True, bn=True):
    assert stride == 1, "TODO(synk): stride > 1 not implemented"
    assert dilation == 1 and groups == 1, \
        "TODO(synk): dilation > 1 / groups > 1 not implemented"

    n, cin, h, w_in = x_nchw.shape
    cout, cin_w, kh, kw = weight_oihw.shape
    assert cin_w == cin

    ho = h + 2 * padding - kh + 1
    wo = w_in + 2 * padding - kw + 1
    hp = h + 2 * padding

    # ---- activations: NCHW -> (N, Hp, W*Cin); pad only the H halo rows ------
    # (W-direction padding is folded into the banded weight below, so no zero
    #  columns are materialized; in a full NHWC pipeline the transpose would
    #  disappear as well.)
    x_rows = jnp.transpose(x_nchw, (0, 2, 3, 1)).reshape(n, h, w_in * cin)
    x_rows = jnp.pad(x_rows.astype(jnp.float32),
                     ((0, 0), (padding, padding), (0, 0)))

    # ---- fold BN (eval mode) into a weight scale + bias ---------------------
    w_hwio = jnp.transpose(weight_oihw, (2, 3, 1, 0)).astype(jnp.float32)
    if bn:
        scale = gamma.astype(jnp.float32) / jnp.sqrt(
            running_var.astype(jnp.float32) + eps)
        bias = beta.astype(jnp.float32) - running_mean.astype(jnp.float32) * scale
    else:
        scale = jnp.ones((cout,), jnp.float32)
        bias = jnp.zeros((cout,), jnp.float32)
    w_scaled = w_hwio * scale[None, None, None, :]

    # ---- banded (Toeplitz) weight: (KH, W*Cin, Wo*Cout) ----------------------
    # w_band[i, p*Cin + c, w*Cout + o] = w_scaled[i, j, c, o]  iff p == w + j - padding
    p_idx = jnp.arange(w_in)[None, :, None]
    wj_idx = (jnp.arange(wo)[None, None, :] +
              jnp.arange(kw)[:, None, None] - padding)
    sel = (p_idx == wj_idx).astype(jnp.float32)                # (KW, W, Wo)
    w_band = jnp.einsum('jpw,ijco->ipcwo', sel, w_scaled)
    w_band = w_band.reshape(kh, w_in * cin, wo * cout)

    bias_row = jnp.tile(bias, wo).reshape(1, wo * cout)

    kernel = functools.partial(_basic_conv_kernel, kh=kh, ho=ho,
                               apply_relu=relu)

    out = pl.pallas_call(
        kernel,
        out_shape=jax.ShapeDtypeStruct((n, ho, wo * cout), jnp.float32),
        grid_spec=pltpu.PrefetchScalarGridSpec(
            num_scalar_prefetch=0,
            grid=(n,),
            in_specs=[
                pl.BlockSpec((1, hp, w_in * cin), lambda b: (b, 0, 0)),
                pl.BlockSpec((kh, w_in * cin, wo * cout), lambda b: (0, 0, 0)),
                pl.BlockSpec((1, wo * cout), lambda b: (0, 0)),
            ],
            out_specs=pl.BlockSpec((1, ho, wo * cout), lambda b: (b, 0, 0)),
        ),
        compiler_params=pltpu.CompilerParams(
            dimension_semantics=("parallel",)),
    )(x_rows, w_band, bias_row)

    # (N, Ho, Wo*Cout) -> NCHW (PyTorch convention).
    return jnp.transpose(out.reshape(n, ho, wo, cout), (0, 3, 1, 2))


def _reference(x_nchw, weight_oihw, gamma, beta, running_mean, running_var,
               *, padding, eps=1e-5):
    y = lax.conv_general_dilated(
        x_nchw.astype(jnp.float32), weight_oihw.astype(jnp.float32),
        window_strides=(1, 1), padding=[(padding, padding), (padding, padding)],
        dimension_numbers=("NCHW", "OIHW", "NCHW"))
    inv = 1.0 / jnp.sqrt(running_var + eps)
    y = (y - running_mean[None, :, None, None]) * inv[None, :, None, None]
    y = y * gamma[None, :, None, None] + beta[None, :, None, None]
    return jnp.maximum(y, 0.0)


if __name__ == "__main__":
    # BasicConv(in_planes=4, out_planes=8, kernel_size=3, stride=1, padding=1)
    N, CIN, COUT, H, W, K, PAD = 2, 4, 8, 16, 16, 3, 1

    key = jax.random.PRNGKey(0)
    k_x, k_w, k_g, k_b, k_m, k_v = jax.random.split(key, 6)

    x = jax.random.normal(k_x, (N, CIN, H, W), jnp.float32)
    weight = jax.random.normal(k_w, (COUT, CIN, K, K), jnp.float32) * 0.1
    gamma = jax.random.uniform(k_g, (COUT,), jnp.float32, 0.5, 1.5)
    beta = jax.random.normal(k_b, (COUT,), jnp.float32) * 0.1
    running_mean = jax.random.normal(k_m, (COUT,), jnp.float32) * 0.1
    running_var = jax.random.uniform(k_v, (COUT,), jnp.float32, 0.5, 1.5)

    out = basic_conv(x, weight, gamma, beta, running_mean, running_var,
                     stride=1, padding=PAD, relu=True, bn=True)
    out = jax.block_until_ready(out)

    ref = _reference(x, weight, gamma, beta, running_mean, running_var,
                     padding=PAD)
    assert out.shape == (N, COUT, H, W), out.shape
    assert jnp.allclose(out, ref, atol=1e-4, rtol=1e-4), \
        float(jnp.max(jnp.abs(out - ref)))

    print("KERNEL_OK")
</pallas_src>

<mosaic_0001>
module attributes {stable_mosaic.version = 11 : i64} {
  func.func @_basic_conv_kernel(%arg0: i32, %arg1: memref<1x18x64xf32, #tpu.memory_space<vmem>>, %arg2: memref<3x64x128xf32, #tpu.memory_space<vmem>>, %arg3: memref<1x128xf32, #tpu.memory_space<vmem>>, %arg4: memref<1x16x128xf32, #tpu.memory_space<vmem>>) attributes {dimension_semantics = [#tpu.dimension_semantics<parallel>], iteration_bounds = array<i64: 2>, scalar_prefetch = 0 : i64, scratch_operands = 0 : i64, tpu.core_type = #tpu.core_type<tc>, window_params = [{transform_indices = @transform_0, window_bounds = array<i64: 1, 18, 64>}, {pipeline_mode = #tpu.pipeline_mode<synchronous>, transform_indices = @transform_1, window_bounds = array<i64: 3, 64, 128>}, {pipeline_mode = #tpu.pipeline_mode<synchronous>, transform_indices = @transform_2, window_bounds = array<i64: 1, 128>}, {transform_indices = @transform_3, window_bounds = array<i64: 1, 16, 128>}]} {
    %c0 = arith.constant 0 : index
    %c0_0 = arith.constant 0 : index
    %c0_1 = arith.constant 0 : index
    %0 = vector.load %arg1[%c0, %c0_0, %c0_1] : memref<1x18x64xf32, #tpu.memory_space<vmem>>, vector<1x16x64xf32>
    %1 = vector.shape_cast %0 : vector<1x16x64xf32> to vector<16x64xf32>
    %c0_2 = arith.constant 0 : index
    %c0_3 = arith.constant 0 : index
    %c0_4 = arith.constant 0 : index
    %2 = vector.load %arg2[%c0_2, %c0_3, %c0_4] : memref<3x64x128xf32, #tpu.memory_space<vmem>>, vector<1x64x128xf32>
    %3 = vector.shape_cast %2 : vector<1x64x128xf32> to vector<64x128xf32>
    %cst = arith.constant dense<0.000000e+00> : vector<16x128xf32>
    %4 = tpu.matmul %1, %3, %cst {dimension_numbers = #tpu.dot_dimension_numbers<[1], [0], [0], [1], [0, 0, 1, 1], [], []>} : vector<16x64xf32>, vector<64x128xf32>, vector<16x128xf32> -> vector<16x128xf32>
    %c0_5 = arith.constant 0 : index
    %c1 = arith.constant 1 : index
    %c0_6 = arith.constant 0 : index
    %5 = vector.load %arg1[%c0_5, %c1, %c0_6] : memref<1x18x64xf32, #tpu.memory_space<vmem>>, vector<1x16x64xf32>
    %6 = vector.shape_cast %5 : vector<1x16x64xf32> to vector<16x64xf32>
    %c1_7 = arith.constant 1 : index
    %c0_8 = arith.constant 0 : index
    %c0_9 = arith.constant 0 : index
    %7 = vector.load %arg2[%c1_7, %c0_8, %c0_9] : memref<3x64x128xf32, #tpu.memory_space<vmem>>, vector<1x64x128xf32>
    %8 = vector.shape_cast %7 : vector<1x64x128xf32> to vector<64x128xf32>
    %cst_10 = arith.constant dense<0.000000e+00> : vector<16x128xf32>
    %9 = tpu.matmul %6, %8, %cst_10 {dimension_numbers = #tpu.dot_dimension_numbers<[1], [0], [0], [1], [0, 0, 1, 1], [], []>} : vector<16x64xf32>, vector<64x128xf32>, vector<16x128xf32> -> vector<16x128xf32>
    %10 = arith.addf %4, %9 : vector<16x128xf32>
    %c0_11 = arith.constant 0 : index
    %c2 = arith.constant 2 : index
    %c0_12 = arith.constant 0 : index
    %11 = vector.load %arg1[%c0_11, %c2, %c0_12] : memref<1x18x64xf32, #tpu.memory_space<vmem>>, vector<1x16x64xf32>
    %12 = vector.shape_cast %11 : vector<1x16x64xf32> to vector<16x64xf32>
    %c2_13 = arith.constant 2 : index
    %c0_14 = arith.constant 0 : index
    %c0_15 = arith.constant 0 : index
    %13 = vector.load %arg2[%c2_13, %c0_14, %c0_15] : memref<3x64x128xf32, #tpu.memory_space<vmem>>, vector<1x64x128xf32>
    %14 = vector.shape_cast %13 : vector<1x64x128xf32> to vector<64x128xf32>
    %cst_16 = arith.constant dense<0.000000e+00> : vector<16x128xf32>
    %15 = tpu.matmul %12, %14, %cst_16 {dimension_numbers = #tpu.dot_dimension_numbers<[1], [0], [0], [1], [0, 0, 1, 1], [], []>} : vector<16x64xf32>, vector<64x128xf32>, vector<16x128xf32> -> vector<16x128xf32>
    %16 = arith.addf %10, %15 : vector<16x128xf32>
    %c0_17 = arith.constant 0 : index
    %c0_18 = arith.constant 0 : index
    %17 = vector.load %arg3[%c0_17, %c0_18] : memref<1x128xf32, #tpu.memory_space<vmem>>, vector<1x128xf32>
    %18 = vector.broadcast %17 : vector<1x128xf32> to vector<16x128xf32>
    %19 = arith.addf %16, %18 : vector<16x128xf32>
    %cst_19 = arith.constant 0.000000e+00 : f32
    %20 = vector.broadcast %cst_19 : f32 to vector<16x128xf32>
    %21 = arith.maximumf %19, %20 : vector<16x128xf32>
    %c0_20 = arith.constant 0 : index
    %c0_21 = arith.constant 0 : index
    %c0_22 = arith.constant 0 : index
    %22 = vector.load %arg4[%c0_20, %c0_21, %c0_22] : memref<1x16x128xf32, #tpu.memory_space<vmem>>, vector<1x16x128xf32>
    %23 = vector.shape_cast %22 : vector<1x16x128xf32> to vector<16x128xf32>
    %24 = vector.shape_cast %21 : vector<16x128xf32> to vector<1x16x128xf32>
    tpu.vector_store %arg4[%c0_20, %c0_21, %c0_22], %24 {strides = array<i32>} : memref<1x16x128xf32, #tpu.memory_space<vmem>>, vector<1x16x128xf32>,
    return
  }
  func.func @transform_0(%arg0: i32) -> (i32, i32, i32) {
    %c0_i32 = arith.constant 0 : i32
    %c0_i32_0 = arith.constant 0 : i32
    %c0_i32_1 = arith.constant 0 : i32
    return %arg0, %c0_i32, %c0_i32_0 : i32, i32, i32
  }
  func.func @transform_1(%arg0: i32) -> (i32, i32, i32) {
    %c0_i32 = arith.constant 0 : i32
    %c0_i32_0 = arith.constant 0 : i32
    %c0_i32_1 = arith.constant 0 : i32
    %c0_i32_2 = arith.constant 0 : i32
    return %c0_i32, %c0_i32_0, %c0_i32_1 : i32, i32, i32
  }
  func.func @transform_2(%arg0: i32) -> (i32, i32) {
    %c0_i32 = arith.constant 0 : i32
    %c0_i32_0 = arith.constant 0 : i32
    %c0_i32_1 = arith.constant 0 : i32
    return %c0_i32, %c0_i32_0 : i32, i32
  }
  func.func @transform_3(%arg0: i32) -> (i32, i32, i32) {
    %c0_i32 = arith.constant 0 : i32
    %c0_i32_0 = arith.constant 0 : i32
    %c0_i32_1 = arith.constant 0 : i32
    return %arg0, %c0_i32, %c0_i32_0 : i32, i32, i32
  }
}

</mosaic_0001>

<bundles_post_ra>
// kernel: tpu_custom_call.1
= control target key start
LH: loop header
LB: loop body
LE: loop exit
PB: predicated region body
PF: predicated region fallthrough
CT: control target
= control target key end

     0   :  { %8 = vsyncpa [#allocation3], 0  ;;  %s722_s0 = inlined_call_operand.vmem [shape: f32[2,18,64], index: 0, kind: input, shape index: {}]   ;;  %s723_s1 = inlined_call_operand.hbm [shape: f32[3,64,128], index: 1, kind: input, shape index: {}]   ;;  %s724_s2 = inlined_call_operand.vmem [shape: f32[1,128], index: 2, kind: input, shape index: {}]   ;;  %s725_s3 = inlined_call_operand.hbm [shape: f32[2,16,128], index: 3, kind: output, shape index: {}]  }
   0x1   :  { %9 = vsyncpa [#allocation4], 0 }
   0x2   :  { %11 = vsyncpa [#allocation4 + $0x1], 0  ;;  %s615_s12 = smov 0   ;;  %s617_s13 = smov 0  }
   0x3   :  { %s619_s14 = smov 0   ;;  %s621_s15 = smov 0  }
   0x4 LB: > { %s636_s16 = sadd.s32 4294967295, %s588_s15   ;;  %s408_s17 = sadd.s32 4294967294, %s588_s15   ;;  %s588_s15 = sphi %s621_s15, %s731_s15   ;;  %s584_s14 = sphi %s619_s14, %s730_s14   ;;  %s580_s13 = sphi %s617_s13, %s729_s13   ;;  %s576_s12 = sphi %s615_s12, %s728_s12  }
   0x5   : > { %s640_s18 = sadd.s32 1, %s588_s15   ;;  %s92_s19 = sadd.s32 1, %s584_s14 }
   0x6   : > { %s89_s20 = ssub.s32 %s588_s15, %s640_s18  ;;  %p102_p0 = scmp.ne.s32.totalorder %s584_s14, %s580_s13 }
   0x7   : > { %p90_p1 = scmp.eq.s32.totalorder %s89_s20, 0  ;;  %p103_p2 = scmp.eq.s32.totalorder %s636_s16, 1 }
   0x8   : > { %p108_p3 = scmp.ne.s32.totalorder %s580_s13, %s576_s12  ;;  %p109_p4 = scmp.eq.s32.totalorder %s408_s17, 1 }
   0x9   : > { %s651_s21 = scalar_select %p90_p1, %s584_s14, %s92_s19  }
   0xa   : > { %p653_p5 = por %p103_p2, %p102_p0  ;;  %p657_p6 = por %p109_p4, %p108_p3 }
   0xb   : > { %p409_p7 = scmp.ge.s32.totalorder %s588_s15, 1  ;;  %p116_p8 = scmp.lt.s32.totalorder %s588_s15, 3 }
   0xc   : > { %p451_p9 = scmp.eq.s32.totalorder %s636_s16, 0  ;;  %s127_s26 = sshll.u32 %s723_s1, 4  ;;  %s128_s26 = int_to_ptr.hbm [resolvable:$true] %s127_s26 }
   0xd   : > { %p117_p10 = pnand %p409_p7, %p116_p8  ;;  %s590_s27 = smov [#allocation2]  }
   0xe   : > { %s129_s28 = sshll.u32 %s590_s27, 4  ;;  %s591_s29 = smov 128   ;;  %s130_s28 = int_to_ptr.vmem [resolvable:$true] %s129_s28 }
   0xf   : > { %p443_p11 = pneg %p117_p10  ;;  %s592_s30 = smov 8  }
  0x10   : > { %156 = sbr.rel (%p117_p10) target bundleno = 188 (0xbc), region = 32 }
  0x11   : > { %p444_p12 = pnand %p451_p9, %p443_p11 }
  0x13   : > { %446 = dma.hbm_to_vmem [thread:$0]  (!%p444_p12), %s128_s26, 3072, %s130_s28, [#allocation3], %s591_s29, %s591_s29, %s592_s30  }
  0x15   : > { %567 = dma.done.wait (%p451_p9), [#allocation3], 3072  }
  0x16   : > { %569 = vsyncadd (%p451_p9), [#allocation3], 4294964224  ;;  %p181_p13 = scmp.lt.s32.totalorder %s636_s16, 1  ;;  %v276_v0 = vld [vmem:[#allocation2 + $0xb8] sm:$0xff]  ;;  %v275_v1 = vld [vmem:[#allocation2 + $0xb0] sm:$0xff]  ;;  %vm207_vm0 = vcmask 523264  }
  0x17   : > { %v206_v2 = vld [vmem:[#allocation2 + $0x78] sm:$0xff]  ;;  %291 = vmatpush.msra.mxu2 %v276_v0  ;;  %v205_v4 = vld [vmem:[#allocation2 + $0x70] sm:$0xff]  ;;  %v274_v5 = vld [vmem:[#allocation2 + $0xa8] sm:$0xff]  ;;  %s178_s9 = sand.u32 1, %s580_s13   ;;  %s427_s19 = sshll.u32 %s636_s16, 4 }
  0x18   : > { %222 = vmatpush.msra.mxu0 %v206_v2  ;;  %v195_v3 = vld [vmem:[#allocation2 + $0x38] sm:$0xff]  ;;  %428 = vmatpush.msra.mxu3 %v206_v2  ;;  %v194_v6 = vld [vmem:[#allocation2 + $0x30] sm:$0xff]  ;;  %v204_v7 = vld [vmem:[#allocation2 + $0x68] sm:$0xff]  ;;  %s675_s4 = scalar_select %p181_p13, %s636_s16, 1 }
  0x19   : > { %251 = vmatpush.msra.mxu1 %v195_v3  ;;  %292 = vmatpush.msra.mxu2 %v275_v1  ;;  %v193_v8 = vld [vmem:[#allocation2 + $0x28] sm:$0xff]  ;;  %v273_v9 = vld [vmem:[#allocation2 + $0xa0] sm:$0xff]  ;;  %v272_v12 = vld [vmem:[#allocation2 + $0x98] sm:$0xff]  ;;  %s414_s17 = sshll.u32 %s178_s9, 4  ;;  %s330_s25 = scalar_lea.hbm %s725_s3, %s427_s19 }
  0x1a   : > { %223 = vmatpush.msra.mxu0 %v205_v4  ;;  %429 = vmatpush.msra.mxu3 %v205_v4  ;;  %v203_v10 = vld [vmem:[#allocation2 + $0x60] sm:$0xff]  ;;  %v202_v13 = vld [vmem:[#allocation2 + $0x58] sm:$0xff]  ;;  %s436_s5 = smul.u32 24, %s675_s4  ;;  %v271_v15 = vld [vmem:[#allocation2 + $0x90] sm:$0xff]  ;;  %s180_s26 = scalar_lea.vmem [#allocation5], %s414_s17 }
  0x1b   : > { %252 = vmatpush.msra.mxu1 %v194_v6  ;;  %293 = vmatpush.msra.mxu2 %v274_v5  ;;  %v192_v11 = vld [vmem:[#allocation2 + $0x20] sm:$0xff]  ;;  %v191_v14 = vld [vmem:[#allocation2 + $0x18] sm:$0xff]  ;;  %v201_v16 = vld [vmem:[#allocation2 + $0x50] sm:$0xff]  ;;  %s331_s27 = sshll.u32 %s180_s26, 4  ;;  %s333_s28 = sshll.u32 %s330_s25, 4  ;;  %s332_s27 = int_to_ptr.vmem [resolvable:$true] %s331_s27  ;;  %s334_s28 = int_to_ptr.hbm [resolvable:$true] %s333_s28 }
  0x1c   : > { %224 = vmatpush.msra.mxu0 %v204_v7  ;;  %430 = vmatpush.msra.mxu3 %v204_v7  ;;  %v190_v17 = vld [vmem:[#allocation2 + $0x10] sm:$0xff]  ;;  %v270_v18 = vld [vmem:[#allocation2 + $0x88] sm:$0xff]  ;;  %s185_s8 = scalar_lea.vmem %s722_s0, %s436_s5  ;;  %v269_v21 = vld [vmem:[#allocation2 + $0x80] sm:$0xff]  ;;  %s319_s29 = scalar_lea.sflag [#allocation4], %s178_s9 }
  0x1d   : > { %253 = vmatpush.msra.mxu1 %v193_v8  ;;  %294 = vmatpush.msra.mxu2 %v273_v9  ;;  %v200_v19 = vld [vmem:[#allocation2 + $0x48] sm:$0xff]  ;;  %v199_v22 = vld [vmem:[#allocation2 + $0x40] sm:$0xff]  ;;  %s536_s16 = sshra.s32 %s334_s28, 4  ;;  %s542_s6 = scalar_lea.hbm %s725_s3, 32  ;;  %s537_s16 = int_to_ptr.hbm [resolvable:$true] %s536_s16 }
  0x1e   : > { %225 = vmatpush.msra.mxu0 %v203_v10  ;;  %431 = vmatpush.msra.mxu3 %v203_v10  ;;  %v189_v20 = vld [vmem:[#allocation2 + $0x8] sm:$0xff]  ;;  %v188_v24 = vld [vmem:[#allocation2] sm:$0xff]  ;;  %s538_s30 = scalar_lea.hbm %s537_s16, 16  ;;  %p543_p3 = scmp.lt.s32.totalorder %s537_s16, %s725_s3 }
  0x1f   : > { %254 = vmatpush.msra.mxu1 %v192_v11  ;;  %295 = vmatpush.msra.mxu2 %v272_v12  ;;  %v266_v23 = vld [vmem:[%s185_s8 + $0x2] sm:$0xff]  ;;  %v267_v28 = vld [vmem:[%s185_s8 + $0xa] sm:$0xff]  ;;  %v491_v33 = vld [vmem:[%s724_s2] ss:$0 sm:$0xff]  ;;  %p539_p0 = scmp.ne.s32.totalorder %s537_s16, %s538_s30  ;;  %p544_p4 = scmp.lt.s32.totalorder %s542_s6, %s538_s30 }
  0x20   : > { %226 = vmatpush.msra.mxu0 %v202_v13  ;;  %432 = vmatpush.msra.mxu3 %v202_v13  ;;  %v196_v25 = vld [vmem:[%s185_s8 + $0x1] sm:$0xff]  ;;  %v197_v27 = vld [vmem:[%s185_s8 + $0x9] sm:$0xff] }
  0x21   : > { %255 = vmatpush.msra.mxu1 %v191_v14  ;;  %296 = vmatpush.msra.mxu2 %v271_v15  ;;  %v186_v26 = vld [vmem:[%s185_s8] sm:$0xff]  ;;  %v187_v29 = vld [vmem:[%s185_s8 + $0x8] sm:$0xff]  ;;  %p540_p1 = pnand %p539_p0, %p653_p5  ;;  %p545_p7 = por %p544_p4, %p543_p3 }
  0x22   : > { %227 = vmatpush.msra.mxu0 %v201_v16  ;;  %433 = vmatpush.msra.mxu3 %v201_v16 }
  0x23   : > { %256 = vmatpush.msra.mxu1 %v190_v17  ;;  %297 = vmatpush.msra.mxu2 %v270_v18  ;;  %p541_p2 = pneg %p540_p1 }
  0x24   : > { %228 = vmatpush.msra.mxu0 %v200_v19  ;;  %434 = vmatpush.msra.mxu3 %v200_v19 }
  0x25   : > { %257 = vmatpush.msra.mxu1 %v189_v20  ;;  %298 = vmatpush.msra.mxu2 %v269_v21  ;;  %p546_p8 = pnand %p545_p7, %p541_p2 }
  0x26   : > { %229 = vmatpush.msra.mxu0 %v199_v22  ;;  %420 = vmatmul.msk.f32.vlgmr.msra.gmra.mxu2 %vm207_vm0, %v266_v23 }
  0x27   : > { %258 = vmatpush.msra.mxu1 %v188_v24  ;;  %416 = vmatmul.msk.f32.vlgmr.msra.gmra.mxu0 %vm207_vm0, %v196_v25 }
  0x28   : > { %418 = vmatmul.msk.f32.vlgmr.msra.gmra.mxu1 %vm207_vm0, %v186_v26  ;;  %435 = vmatpush.msra.mxu3 %v199_v22 }
  0x29   : > { %417 = vmatmul.msk.f32.vlgmr.msra.gmra.mxu3 %vm207_vm0, %v197_v27 }
  0x2e   : > { %421 = vmatmul.msk.f32.gmra.mxu2 %vm207_vm0, %v267_v28 }
  0x30   : > { %419 = vmatmul.msk.f32.gmra.mxu1 %vm207_vm0, %v187_v29 }
  0xa4   : > { %v231_v30 = vpop.f32.mrf.mxu0 }
  0xa5   : > { %v260_v31 = vpop.f32.mrf.mxu1 }
  0xa6   : > { %v261_v32 = vadd.f32 %v260_v31, %v231_v30 }
  0xa9   : > { %v300_v34 = vpop.f32.mrf.mxu2 }
  0xaa   : > { %v306_v35 = vadd.f32 %v300_v34, %v261_v32 }
  0xac   : > { %v312_v36 = vadd.f32 %v491_v33, %v306_v35  ;;  %v234_v37 = vpop.f32.mrf.mxu3 }
  0xad   : > { %v263_v38 = vpop.f32.mrf.mxu1 }
  0xae   : > { %v314_v39 = vmax.f32 %v312_v36, 0.0  ;;  %v264_v40 = vadd.f32 %v263_v38, %v234_v37 }
  0xb0   : > { %316 = vst [vmem:[%s180_s26] sm:$0xff] %v314_v39 }
  0xb1   : > { %v303_v41 = vpop.f32.mrf.mxu2 }
  0xb2   : > { %v307_v42 = vadd.f32 %v303_v41, %v264_v40 }
  0xb4   : > { %v313_v43 = vadd.f32 %v491_v33, %v307_v42 }
  0xb6   : > { %v315_v44 = vmax.f32 %v313_v43, 0.0 }
  0xb8   : > { %317 = vst [vmem:[%s180_s26 + $0x8] sm:$0xff] %v315_v44 }
  0xb9   : > { %549 = shalt.err (!%p546_p8)
}
  0xba   : > { %s593_s9 = smov 128   ;;  %s594_s10 = smov 8  }
  0xbb   : > { %441 = dma.vmem_to_hbm [thread:$0]  (%p653_p5), %s332_s27, 256, %s334_s28, %s319_s29, %s593_s9, %s593_s9, %s594_s10  }
  0xbc PF: > { %p453_p9 = scmp.ge.s32.totalorder %s588_s15, 2  ;;  %s348_s11 = sand.u32 1, %s576_s12  }
  0xbd   : > { %s349_s17 = scalar_lea.sflag [#allocation4], %s348_s11 }
  0xbe   : > { %p448_p10 = pnand %p453_p9, %p657_p6 }
  0xc0   : > { %p449_p11 = pneg %p448_p10 }
  0xc2   : > { %571 = dma.done.wait (%p449_p11), %s349_s17, 256  }
  0xc3   : > { %573 = vsyncadd (%p449_p11), %s349_s17, 4294967040  ;;  %p14_p12 = scmp.ge.s32.totalorder %s640_s18, 4   ;;  %s728_s12 = smov %s580_s13 }
  0xc4   : > { %s729_s13 = smov %s584_s14  ;;  %s730_s14 = smov %s651_s21 }
  0xc5   : > { %s731_s15 = smov %s640_s18  ;;  %16 = sbr.rel (!%p14_p12) target bundleno = 4 (0x4), region = 74 }
  0xca   :  { %355 = vsyncpa [#allocation3], 1 }
  0xcb   :  { %357 = vsyncpa [#allocation3 + $0x1], 1 }
  0xcc   :  { %358 = vsyncpa [#allocation4], 1 }
  0xcd   :  { %360 = vsyncpa [#allocation4 + $0x1], 1 }

</bundles_post_ra>
